<compile_context>
chip_gen: v7x
topology: tpu7x:2x2x1
jax: 0.10.0
libtpu: 0.0.40
codegen_flags: <defaults>
</compile_context>

<pallas_src>
import jax
import jax.numpy as jnp
from jax.experimental import pallas as pl
from jax.experimental.pallas import tpu as pltpu


def _round_up(n, m):
    return ((n + m - 1) // m) * m


def _pad_feature_dim(n):
    # v6e/v7x MXUs are 256 deep: pad contraction dims that genuinely exceed 128 to a
    # multiple of 256; don't over-pad small dims (they stay at one 128-lane tile).
    return _round_up(n, 128) if n <= 128 else _round_up(n, 256)


def _vmem_capacity_bytes():
    # Per-TensorCore VMEM capacity; conservative (v7x-sized) fallback if the query fails.
    try:
        cap = getattr(pltpu.get_tpu_info(), "vmem_capacity_bytes", None)
        if cap:
            return int(cap)
    except Exception:
        pass
    return 64 << 20


def _mlp_kernel(x_ref, w1_ref, b1_ref, w2_ref, b2_ref, o_ref):
    # x arrives in its native dtype; cast to bf16 on the VPU right before the MXU so the
    # wrapper never needs a separate pad/cast HBM pass over the activations.
    x = x_ref[...].astype(jnp.bfloat16)
    h = jnp.dot(x, w1_ref[...], preferred_element_type=jnp.float32)
    h = jnp.maximum(h + b1_ref[...], 0.0)                 # f32 bias add + ReLU (VPU)
    y = jnp.dot(h.astype(jnp.bfloat16), w2_ref[...],
                preferred_element_type=jnp.float32)
    o_ref[...] = (y + b2_ref[...]).astype(o_ref.dtype)    # lane-dense (tb, out_p) store
    # NOTE: if profiling shows ld/st (spill) saturation at large tb, split the batch tile
    # into 128-row sub-chunks with lax.fori_loop(..., unroll=True) here.


def prepare_params(w1_t, b1, w2_t, b2):
    """One-time parameter prep: pad to MXU-friendly tiles and cast weights to bf16.

    Hoisted out of the per-call forward so repeated steps don't re-read / re-write the
    weight matrices in HBM (and so it const-folds when the params are jit constants).

    w1_t: (input_size, hidden_size)   (PyTorch weight, pre-transposed)
    b1:   (hidden_size,)
    w2_t: (hidden_size, output_size)
    b2:   (output_size,)
    """
    in_size, hid_size = w1_t.shape
    out_size = w2_t.shape[1]
    in_p = _pad_feature_dim(in_size)
    hid_p = _pad_feature_dim(hid_size)
    out_p = _round_up(out_size, 128)

    # Zero padding is semantics-preserving: padded K rows/cols contribute 0, padded hidden
    # columns give relu(0)=0 and hit zero rows of W2, padded output lanes are sliced away.
    w1_p = jnp.pad(w1_t, ((0, in_p - in_size), (0, hid_p - hid_size))).astype(jnp.bfloat16)
    w2_p = jnp.pad(w2_t, ((0, hid_p - hid_size), (0, out_p - out_size))).astype(jnp.bfloat16)
    b1_p = jnp.pad(jnp.asarray(b1, jnp.float32).reshape(1, -1),
                   ((0, 0), (0, hid_p - hid_size)))
    b2_p = jnp.pad(jnp.asarray(b2, jnp.float32).reshape(1, -1),
                   ((0, 0), (0, out_p - out_size)))
    return (w1_p, b1_p, w2_p, b2_p, (in_size, hid_size, out_size))


def linear_network_forward(x, prepared, *, block_batch=512):
    """Forward pass of the 2-layer MLP using pre-prepared (padded, bf16) parameters."""
    w1_p, b1_p, w2_p, b2_p, (in_size, hid_size, out_size) = prepared
    in_p, hid_p = w1_p.shape
    out_p = w2_p.shape[1]

    orig_dtype = x.dtype
    lead = x.shape[:-1]
    x2 = x.reshape(-1, in_size)
    B = x2.shape[0]

    # Feature-dim pad only when the true input width isn't already lane-aligned; the batch
    # axis needs no padding (cdiv grid + masked partial last block, sliced away below).
    if in_p != in_size:
        x2 = jnp.pad(x2, ((0, 0), (0, in_p - in_size)))

    out_dtype = jnp.bfloat16 if orig_dtype == jnp.bfloat16 else jnp.float32
    x_bytes = jnp.dtype(x2.dtype).itemsize
    out_bytes = jnp.dtype(out_dtype).itemsize

    # Per-TensorCore VMEM budget (v7x: 64 MiB per core — each core holds its own resident
    # weight copy under "parallel" sharding, so budget per core, not per chip).
    budget = int(0.85 * _vmem_capacity_bytes())
    weight_bytes = (2 * (in_p * hid_p + hid_p * out_p) * 2   # bf16 weights, 2 buffers each
                    + 2 * (hid_p + out_p) * 4)               # f32 biases, 2 buffers each

    def est_vmem(tb):
        return (2 * tb * in_p * x_bytes        # x tiles (double-buffered)
                + 2 * tb * out_p * out_bytes   # out tiles (double-buffered)
                + tb * hid_p * 6               # f32 intermediate h + bf16 copy
                + weight_bytes)

    # Batch tile: as large as fits the budget, multiple of 16 for bf16 sublane packing.
    tb = max(16, min(_round_up(block_batch, 16), _round_up(B, 16)))
    while tb > 16 and est_vmem(tb) > budget:
        tb = max(16, _round_up(tb // 2, 16))
    vmem_limit = int(min(max(int(1.25 * est_vmem(tb)), 16 << 20), budget))

    out = pl.pallas_call(
        _mlp_kernel,
        out_shape=jax.ShapeDtypeStruct((B, out_p), out_dtype),
        grid=(pl.cdiv(B, tb),),
        in_specs=[
            pl.BlockSpec((tb, in_p), lambda i: (i, 0)),       # x: batch-tiled, pipelined
            pl.BlockSpec((in_p, hid_p), lambda i: (0, 0)),    # W1: VMEM-resident
            pl.BlockSpec((1, hid_p), lambda i: (0, 0)),       # b1: VMEM-resident
            pl.BlockSpec((hid_p, out_p), lambda i: (0, 0)),   # W2: VMEM-resident
            pl.BlockSpec((1, out_p), lambda i: (0, 0)),       # b2: VMEM-resident
        ],
        out_specs=pl.BlockSpec((tb, out_p), lambda i: (i, 0)),
        compiler_params=pltpu.CompilerParams(
            dimension_semantics=("parallel",),   # batch tiles shard across v7x's two TCs
            vmem_limit_bytes=vmem_limit,
        ),
    )(x2, w1_p, b1_p, w2_p, b2_p)

    out = out[:, :out_size].astype(orig_dtype)
    return out.reshape(*lead, out_size)


def init_params(key, input_size, hidden_size, output_size):
    """Deterministic init mirroring nn.Linear default: U(-1/sqrt(fan_in), 1/sqrt(fan_in))."""
    k1, k2, k3, k4 = jax.random.split(key, 4)
    lim1 = 1.0 / jnp.sqrt(jnp.float32(input_size))
    lim2 = 1.0 / jnp.sqrt(jnp.float32(hidden_size))
    # Stored pre-transposed relative to PyTorch's (out, in) layout.
    w1_t = jax.random.uniform(k1, (input_size, hidden_size), jnp.float32, -lim1, lim1)
    b1 = jax.random.uniform(k2, (hidden_size,), jnp.float32, -lim1, lim1)
    w2_t = jax.random.uniform(k3, (hidden_size, output_size), jnp.float32, -lim2, lim2)
    b2 = jax.random.uniform(k4, (output_size,), jnp.float32, -lim2, lim2)
    return w1_t, b1, w2_t, b2


# TODO(synk): Linear_Network.save() (torch.save checkpointing) is host-side I/O with no
# Pallas equivalent; only the forward pass is implemented here.

if __name__ == "__main__":
    input_size, hidden_size, output_size = 16, 32, 4
    batch = 2

    key = jax.random.PRNGKey(0)
    kx, kp = jax.random.split(key)
    x = jax.random.normal(kx, (batch, input_size), jnp.float32)
    w1_t, b1, w2_t, b2 = init_params(kp, input_size, hidden_size, output_size)

    prepared = prepare_params(w1_t, b1, w2_t, b2)   # one-time weight prep
    out = linear_network_forward(x, prepared)
    out = jax.block_until_ready(out)

    # Reference in plain JAX (f32). Kernel uses bf16 MXU inputs with f32 accumulation,
    # so allow a modest tolerance. (Use precision=HIGHEST on the dots for near-f32 accuracy
    # at ~3x MXU cost if required.)
    ref = jnp.maximum(x @ w1_t + b1[None, :], 0.0) @ w2_t + b2[None, :]
    assert out.shape == (batch, output_size), out.shape
    assert jnp.allclose(out, ref, atol=2e-2, rtol=2e-2), jnp.max(jnp.abs(out - ref))

    print("KERNEL_OK")
</pallas_src>

<mosaic_0001>
module attributes {stable_mosaic.version = 11 : i64} {
  func.func @_mlp_kernel(%arg0: i32, %arg1: memref<16x128xf32, #tpu.memory_space<vmem>>, %arg2: memref<128x128xbf16, #tpu.memory_space<vmem>>, %arg3: memref<1x128xf32, #tpu.memory_space<vmem>>, %arg4: memref<128x128xbf16, #tpu.memory_space<vmem>>, %arg5: memref<1x128xf32, #tpu.memory_space<vmem>>, %arg6: memref<16x128xf32, #tpu.memory_space<vmem>>) attributes {dimension_semantics = [#tpu.dimension_semantics<parallel>], iteration_bounds = array<i64: 1>, scalar_prefetch = 0 : i64, scratch_operands = 0 : i64, tpu.core_type = #tpu.core_type<tc>, window_params = [{transform_indices = @transform_0, window_bounds = array<i64: 16, 128>}, {pipeline_mode = #tpu.pipeline_mode<synchronous>, transform_indices = @transform_1, window_bounds = array<i64: 128, 128>}, {pipeline_mode = #tpu.pipeline_mode<synchronous>, transform_indices = @transform_2, window_bounds = array<i64: 1, 128>}, {pipeline_mode = #tpu.pipeline_mode<synchronous>, transform_indices = @transform_3, window_bounds = array<i64: 128, 128>}, {pipeline_mode = #tpu.pipeline_mode<synchronous>, transform_indices = @transform_4, window_bounds = array<i64: 1, 128>}, {transform_indices = @transform_5, window_bounds = array<i64: 16, 128>}]} {
    %c0 = arith.constant 0 : index
    %c0_0 = arith.constant 0 : index
    %0 = vector.load %arg1[%c0, %c0_0] : memref<16x128xf32, #tpu.memory_space<vmem>>, vector<16x128xf32>
    %1 = arith.truncf %0 : vector<16x128xf32> to vector<16x128xbf16>
    %c0_1 = arith.constant 0 : index
    %c0_2 = arith.constant 0 : index
    %2 = vector.load %arg2[%c0_1, %c0_2] : memref<128x128xbf16, #tpu.memory_space<vmem>>, vector<128x128xbf16>
    %cst = arith.constant dense<0.000000e+00> : vector<16x128xf32>
    %3 = tpu.matmul %1, %2, %cst {dimension_numbers = #tpu.dot_dimension_numbers<[1], [0], [0], [1], [0, 0, 1, 1], [], []>} : vector<16x128xbf16>, vector<128x128xbf16>, vector<16x128xf32> -> vector<16x128xf32>
    %c0_3 = arith.constant 0 : index
    %c0_4 = arith.constant 0 : index
    %4 = vector.load %arg3[%c0_3, %c0_4] : memref<1x128xf32, #tpu.memory_space<vmem>>, vector<1x128xf32>
    %5 = vector.broadcast %4 : vector<1x128xf32> to vector<16x128xf32>
    %6 = arith.addf %3, %5 : vector<16x128xf32>
    %cst_5 = arith.constant 0.000000e+00 : f32
    %7 = vector.broadcast %cst_5 : f32 to vector<16x128xf32>
    %8 = arith.maximumf %6, %7 : vector<16x128xf32>
    %9 = arith.truncf %8 : vector<16x128xf32> to vector<16x128xbf16>
    %c0_6 = arith.constant 0 : index
    %c0_7 = arith.constant 0 : index
    %10 = vector.load %arg4[%c0_6, %c0_7] : memref<128x128xbf16, #tpu.memory_space<vmem>>, vector<128x128xbf16>
    %cst_8 = arith.constant dense<0.000000e+00> : vector<16x128xf32>
    %11 = tpu.matmul %9, %10, %cst_8 {dimension_numbers = #tpu.dot_dimension_numbers<[1], [0], [0], [1], [0, 0, 1, 1], [], []>} : vector<16x128xbf16>, vector<128x128xbf16>, vector<16x128xf32> -> vector<16x128xf32>
    %c0_9 = arith.constant 0 : index
    %c0_10 = arith.constant 0 : index
    %12 = vector.load %arg5[%c0_9, %c0_10] : memref<1x128xf32, #tpu.memory_space<vmem>>, vector<1x128xf32>
    %13 = vector.broadcast %12 : vector<1x128xf32> to vector<16x128xf32>
    %14 = arith.addf %11, %13 : vector<16x128xf32>
    %c0_11 = arith.constant 0 : index
    %c0_12 = arith.constant 0 : index
    %15 = vector.load %arg6[%c0_11, %c0_12] : memref<16x128xf32, #tpu.memory_space<vmem>>, vector<16x128xf32>
    tpu.vector_store %arg6[%c0_11, %c0_12], %14 {strides = array<i32>} : memref<16x128xf32, #tpu.memory_space<vmem>>, vector<16x128xf32>,
    return
  }
  func.func @transform_0(%arg0: i32) -> (i32, i32) {
    %c0_i32 = arith.constant 0 : i32
    %c0_i32_0 = arith.constant 0 : i32
    return %arg0, %c0_i32 : i32, i32
  }
  func.func @transform_1(%arg0: i32) -> (i32, i32) {
    %c0_i32 = arith.constant 0 : i32
    %c0_i32_0 = arith.constant 0 : i32
    %c0_i32_1 = arith.constant 0 : i32
    return %c0_i32, %c0_i32_0 : i32, i32
  }
  func.func @transform_2(%arg0: i32) -> (i32, i32) {
    %c0_i32 = arith.constant 0 : i32
    %c0_i32_0 = arith.constant 0 : i32
    %c0_i32_1 = arith.constant 0 : i32
    return %c0_i32, %c0_i32_0 : i32, i32
  }
  func.func @transform_3(%arg0: i32) -> (i32, i32) {
    %c0_i32 = arith.constant 0 : i32
    %c0_i32_0 = arith.constant 0 : i32
    %c0_i32_1 = arith.constant 0 : i32
    return %c0_i32, %c0_i32_0 : i32, i32
  }
  func.func @transform_4(%arg0: i32) -> (i32, i32) {
    %c0_i32 = arith.constant 0 : i32
    %c0_i32_0 = arith.constant 0 : i32
    %c0_i32_1 = arith.constant 0 : i32
    return %c0_i32, %c0_i32_0 : i32, i32
  }
  func.func @transform_5(%arg0: i32) -> (i32, i32) {
    %c0_i32 = arith.constant 0 : i32
    %c0_i32_0 = arith.constant 0 : i32
    return %arg0, %c0_i32 : i32, i32
  }
}

</mosaic_0001>

<bundles_post_ra>
// kernel: tpu_custom_call.1
= control target key start
LH: loop header
LB: loop body
LE: loop exit
PB: predicated region body
PF: predicated region fallthrough
CT: control target
= control target key end

     0   :  { %10 = vsyncpa [#allocation3], 0  ;;  %s615_s0 = inlined_call_operand.hbm [shape: f32[2,128], index: 0, kind: input, shape index: {}]   ;;  %s616_s1 = inlined_call_operand.hbm [shape: bf16[128,128], index: 1, kind: input, shape index: {}]   ;;  %s617_s2 = inlined_call_operand.vmem [shape: f32[1,128], index: 2, kind: input, shape index: {}]   ;;  %s618_s3 = inlined_call_operand.hbm [shape: bf16[128,128], index: 3, kind: input, shape index: {}]   ;;  %s619_s4 = inlined_call_operand.vmem [shape: f32[1,128], index: 4, kind: input, shape index: {}]   ;;  %s620_s5 = inlined_call_operand.hbm [shape: f32[2,128], index: 5, kind: output, shape index: {}]  }
   0x1   :  { %11 = vsyncpa [#allocation6], 0 }
   0x2   :  { %12 = vsyncpa [#allocation4], 0 }
   0x3   :  { %17 = vsyncadd [#allocation3], 224  ;;  %s509_s18 = smov [#allocation5]   ;;  %s415_s22 = scalar_lea.hbm %s616_s1, 1024 }
   0x4   :  { %s30_s19 = sshll.u32 %s509_s18, 4  ;;  %p416_p0 = scmp.ne.s32.totalorder %s616_s1, %s415_s22  ;;  %s31_s19 = int_to_ptr.vmem [resolvable:$true] %s30_s19 }
   0x5   :  { %p419_p1 = scmp.lt.u32.totalorder %s415_s22, %s616_s1 }
   0x7   :  { %p421_p2 = pnand %p419_p1, %p416_p0 }
   0x9   :  { %424 = shalt.err (!%p421_p2)
}
   0xa   :  { %s425_s27 = scalar_lea.vmem %s31_s19, 1024  ;;  %p430_p4 = scmp.lt.s32.totalorder %s31_s19, %s31_s19 }
   0xb   :  { %p426_p3 = scmp.ne.s32.totalorder %s31_s19, %s425_s27  ;;  %p431_p5 = scmp.lt.s32.totalorder %s425_s27, %s425_s27 }
   0xd   :  { %p432_p6 = por %p431_p5, %p430_p4 }
   0xf   :  { %p433_p7 = pnand %p432_p6, %p426_p3 }
  0x11   :  { %436 = shalt.err (!%p433_p7)
}
  0x12   :  { %s510_s28 = smov 64   ;;  %s511_s29 = smov 4  }
  0x13   :  { %36 = dma.hbm_to_vmem [thread:$0]  %s616_s1, 1024, %s31_s19, [#allocation6], %s510_s28, %s510_s28, %s511_s29  }
  0x14   :  { %s512_s7 = smov [#allocation2]   ;;  %s437_s11 = scalar_lea.hbm %s615_s0, 32 }
  0x15   :  { %s18_s8 = sshll.u32 %s512_s7, 4  ;;  %p438_p8 = scmp.ne.s32.totalorder %s615_s0, %s437_s11  ;;  %s19_s8 = int_to_ptr.vmem [resolvable:$true] %s18_s8 }
  0x16   :  { %p441_p9 = scmp.lt.u32.totalorder %s437_s11, %s615_s0 }
  0x18   :  { %p443_p10 = pnand %p441_p9, %p438_p8 }
  0x1a   :  { %446 = shalt.err (!%p443_p10)
}
  0x1b   :  { %s447_s16 = scalar_lea.vmem %s19_s8, 32  ;;  %s451_s1 = scalar_lea.vmem %s19_s8, 256 }
  0x1c   :  { %p448_p11 = scmp.ne.s32.totalorder %s19_s8, %s447_s16  ;;  %p452_p12 = scmp.lt.s32.totalorder %s19_s8, %s19_s8 }
  0x1d   :  { %p453_p13 = scmp.lt.s32.totalorder %s451_s1, %s447_s16 }
  0x1f   :  { %p454_p0 = por %p453_p13, %p452_p12 }
  0x21   :  { %p455_p1 = pnand %p454_p0, %p448_p11 }
  0x23   :  { %458 = shalt.err (!%p455_p1)
}
  0x24   :  { %s513_s17 = smov 32   ;;  %s514_s18 = smov 2  }
  0x25   :  { %24 = dma.hbm_to_vmem [thread:$0]  %s615_s0, 32, %s19_s8, [#allocation3], %s513_s17, %s513_s17, %s514_s18  }
  0x26   :  { %s515_s21 = smov [#allocation7]   ;;  %s459_s25 = scalar_lea.hbm %s618_s3, 1024 }
  0x27   :  { %s44_s22 = sshll.u32 %s515_s21, 4  ;;  %p460_p2 = scmp.ne.s32.totalorder %s618_s3, %s459_s25  ;;  %s45_s22 = int_to_ptr.vmem [resolvable:$true] %s44_s22 }
  0x28   :  { %p463_p3 = scmp.lt.u32.totalorder %s459_s25, %s618_s3 }
  0x2a   :  { %p465_p4 = pnand %p463_p3, %p460_p2 }
  0x2c   :  { %468 = shalt.err (!%p465_p4)
}
  0x2d   :  { %s469_s7 = scalar_lea.vmem %s45_s22, 1024  ;;  %p474_p6 = scmp.lt.s32.totalorder %s45_s22, %s45_s22 }
  0x2e   :  { %p470_p5 = scmp.ne.s32.totalorder %s45_s22, %s469_s7  ;;  %p475_p7 = scmp.lt.s32.totalorder %s469_s7, %s469_s7 }
  0x30   :  { %p476_p8 = por %p475_p7, %p474_p6 }
  0x32   :  { %p477_p9 = pnand %p476_p8, %p470_p5 }
  0x34   :  { %480 = shalt.err (!%p477_p9)
}
  0x35   :  { %50 = dma.hbm_to_vmem [thread:$0]  %s618_s3, 1024, %s45_s22, [#allocation6], %s510_s28, %s510_s28, %s511_s29  }
  0x36   :  { %503 = dma.done.wait [#allocation3], 256  }
  0x37   :  { %504 = vsyncadd [#allocation3], 4294967040 }
  0x38   :  { %505 = dma.done.wait [#allocation6], 2048  }
  0x39   :  { %506 = vsyncadd [#allocation6], 4294965248  ;;  %v516_v0 = vmov 0.0   ;;  %vm517_vm0 = vmmov 0   ;;  %v399_v1 = vld [vmem:[#allocation5] sm:$0xff]   ;;  %v400_v2 = vld [vmem:[#allocation5 + $0x8] sm:$0xff]  }
  0x3a   :  { %349 = vmatprep.subr.bf16.mxu0 %v516_v0  ;;  %365 = vmatprep.mubr.msk.bf16.mxu0 %vm517_vm0, %v516_v0  ;;  %v401_v3 = vld [vmem:[#allocation5 + $0x10] sm:$0xff]   ;;  %v407_v4 = vld [vmem:[#allocation7] sm:$0xff]   ;;  %v402_v5 = vld [vmem:[#allocation5 + $0x18] sm:$0xff]  }
  0x3b   :  { %369 = vmatprep.subr.bf16.mxu1 %v516_v0  ;;  %385 = vmatprep.mubr.msk.bf16.mxu1 %vm517_vm0, %v516_v0  ;;  %v408_v6 = vld [vmem:[#allocation7 + $0x8] sm:$0xff]   ;;  %v403_v7 = vld [vmem:[#allocation5 + $0x20] sm:$0xff]   ;;  %v409_v8 = vld [vmem:[#allocation7 + $0x10] sm:$0xff]  }
  0x3c   :  { %350 = vmatpush3.bf16.msra.mxu0 %v399_v1  ;;  %370 = vmatpush3.bf16.msra.mxu1 %v407_v4  ;;  %v404_v9 = vld [vmem:[#allocation5 + $0x28] sm:$0xff]   ;;  %v410_v10 = vld [vmem:[#allocation7 + $0x18] sm:$0xff]   ;;  %v405_v11 = vld [vmem:[#allocation5 + $0x30] sm:$0xff]  }
  0x3d   :  { %351 = vmatprep.subr.bf16.mxu0 %v516_v0  ;;  %371 = vmatprep.subr.bf16.mxu1 %v516_v0  ;;  %v411_v12 = vld [vmem:[#allocation7 + $0x20] sm:$0xff]   ;;  %v406_v13 = vld [vmem:[#allocation5 + $0x38] sm:$0xff]   ;;  %v63_v14 = vld [vmem:[#allocation2] sm:$0xff] }
  0x3e   :  { %v64_v15 = vld [vmem:[#allocation2 + $0x8] sm:$0xff]  ;;  %v412_v16 = vld [vmem:[#allocation7 + $0x28] sm:$0xff]   ;;  %v413_v18 = vld [vmem:[#allocation7 + $0x30] sm:$0xff]  }
  0x3f   :  { %v65_v17 = vpack.c.bf16 %v64_v15, %v63_v14  ;;  %v414_v19 = vld [vmem:[#allocation7 + $0x38] sm:$0xff]   ;;  %v313_v20 = vld [vmem:[%s617_s2] ss:$0 sm:$0xff] }
  0x40   :  { %352 = vmatpush3.bf16.msra.mxu0 %v400_v2  ;;  %372 = vmatpush3.bf16.msra.mxu1 %v408_v6  ;;  %v322_v30 = vld [vmem:[%s619_s4] ss:$0 sm:$0xff] }
  0x41   :  { %353 = vmatprep.subr.bf16.mxu0 %v516_v0  ;;  %373 = vmatprep.subr.bf16.mxu1 %v516_v0 }
  0x44   :  { %354 = vmatpush3.bf16.msra.mxu0 %v401_v3  ;;  %374 = vmatpush3.bf16.msra.mxu1 %v409_v8 }
  0x45   :  { %355 = vmatprep.subr.bf16.mxu0 %v516_v0  ;;  %375 = vmatprep.subr.bf16.mxu1 %v516_v0 }
  0x48   :  { %356 = vmatpush3.bf16.msra.mxu0 %v402_v5  ;;  %376 = vmatpush3.bf16.msra.mxu1 %v410_v10 }
  0x49   :  { %357 = vmatprep.subr.bf16.mxu0 %v516_v0  ;;  %377 = vmatprep.subr.bf16.mxu1 %v516_v0 }
  0x4c   :  { %358 = vmatpush3.bf16.msra.mxu0 %v403_v7  ;;  %378 = vmatpush3.bf16.msra.mxu1 %v411_v12 }
  0x4d   :  { %359 = vmatprep.subr.bf16.mxu0 %v516_v0  ;;  %379 = vmatprep.subr.bf16.mxu1 %v516_v0 }
  0x50   :  { %360 = vmatpush3.bf16.msra.mxu0 %v404_v9  ;;  %380 = vmatpush3.bf16.msra.mxu1 %v412_v16 }
  0x51   :  { %361 = vmatprep.subr.bf16.mxu0 %v516_v0  ;;  %381 = vmatprep.subr.bf16.mxu1 %v516_v0 }
  0x54   :  { %362 = vmatpush3.bf16.msra.mxu0 %v405_v11  ;;  %382 = vmatpush3.bf16.msra.mxu1 %v413_v18 }
  0x55   :  { %363 = vmatprep.subr.bf16.mxu0 %v516_v0  ;;  %383 = vmatprep.subr.bf16.mxu1 %v516_v0 }
  0x58   :  { %364 = vmatpush3.bf16.msra.mxu0 %v406_v13  ;;  %384 = vmatpush3.bf16.msra.mxu1 %v414_v19 }
  0x5b   :  { %366 = vmatmul.mubr.bf16.vlgmr.msra.gmra.mrb[0].mxu0 %v65_v17 }
 0x12e   :  { %v171_v21 = vpop.f32.mrb[0].mxu0 }
 0x12f   :  { %v172_v22 = vadd.f32 %v313_v20, %v171_v21  ;;  %v367_v23 = vpop.f32.mrb[1].mxu0 }
 0x130   :  { %v174_v24 = vpop.f32.mrb[2].mxu0 }
 0x131   :  { %v175_v25 = vadd.f32 %v313_v20, %v174_v24  ;;  %v368_v26 = vpop.f32.mrb[3].mxu0  ;;  %v178_v27 = vmax.f32 %v172_v22, 0.0 }
 0x133   :  { %v179_v28 = vmax.f32 %v175_v25, 0.0 }
 0x135   :  { %v180_v29 = vpack.c.bf16 %v179_v28, %v178_v27 }
 0x137   :  { %386 = vmatmul.mubr.bf16.vlgmr.msra.gmra.mrb[0].mxu1 %v180_v29 }
 0x20a   :  { %v286_v31 = vpop.f32.mrb[0].mxu1 }
 0x20b   :  { %v287_v32 = vadd.f32 %v322_v30, %v286_v31  ;;  %v387_v33 = vpop.f32.mrb[1].mxu1 }
 0x20c   :  { %v289_v34 = vpop.f32.mrb[2].mxu1 }
 0x20d   :  { %293 = vst [vmem:[#allocation8] sm:$0xff] %v287_v32  ;;  %v290_v35 = vadd.f32 %v322_v30, %v289_v34  ;;  %v388_v36 = vpop.f32.mrb[3].mxu1 }
 0x20f   :  { %294 = vst [vmem:[#allocation8 + $0x8] sm:$0xff] %v290_v35 }
 0x210   :  { %299 = vsyncadd [#allocation4], 224  ;;  %s518_s2 = smov [#allocation8]  }
 0x211   :  { %s300_s10 = sshll.u32 %s518_s2, 4  ;;  %s301_s10 = int_to_ptr.vmem [resolvable:$true] %s300_s10 }
 0x212   :  { %s481_s11 = scalar_lea.vmem %s301_s10, 32  ;;  %s485_s12 = scalar_lea.vmem %s301_s10, 256 }
 0x213   :  { %p482_p10 = scmp.ne.s32.totalorder %s301_s10, %s481_s11  ;;  %p486_p11 = scmp.lt.s32.totalorder %s301_s10, %s301_s10 }
 0x214   :  { %p487_p12 = scmp.lt.s32.totalorder %s485_s12, %s481_s11 }
 0x216   :  { %p488_p13 = por %p487_p12, %p486_p11 }
 0x218   :  { %p489_p0 = pnand %p488_p13, %p482_p10 }
 0x21a   :  { %492 = shalt.err (!%p489_p0)
}
 0x21b   :  { %s493_s14 = scalar_lea.hbm %s620_s5, 32 }
 0x21c   :  { %p494_p1 = scmp.ne.s32.totalorder %s620_s5, %s493_s14  ;;  %p497_p2 = scmp.lt.u32.totalorder %s493_s14, %s620_s5 }
 0x21e   :  { %p499_p3 = pnand %p497_p2, %p494_p1 }
 0x220   :  { %502 = shalt.err (!%p499_p3)
}
 0x221   :  { %306 = dma.vmem_to_hbm [thread:$0]  %s301_s10, 32, %s620_s5, [#allocation4], %s513_s17, %s513_s17, %s514_s18  }
 0x222   :  { %507 = dma.done.wait [#allocation4], 256  }
 0x223   :  { %508 = vsyncadd [#allocation4], 4294967040 }
 0x224   :  { %310 = vsyncpa [#allocation3], 1 }
 0x225   :  { %311 = vsyncpa [#allocation6], 1 }
 0x226   :  { %312 = vsyncpa [#allocation4], 1 }

</bundles_post_ra>
